<compile_context>
chip_gen: v6e
topology: v6e:2x2x1
jax: 0.10.0
libtpu: 0.0.40
codegen_flags: <defaults>
</compile_context>

<pallas_src>
import functools

import jax
import jax.numpy as jnp
from jax import lax
from jax.experimental import pallas as pl
from jax.experimental.pallas import tpu as pltpu

_LANES = 128  # lane width of the fused head output slab


def _round_up(n, m):
    return ((n + m - 1) // m) * m


def _pokernn_kernel(x_ref, w1_ref, b1_ref, w2_ref, b2_ref, wh_ref, bh_ref,
                    out_ref, *, action_size):
    x = x_ref[...]

    # fc1 + relu   (padded K: extra x lanes are zero, extra weight rows are zero)
    h1 = jnp.dot(x, w1_ref[...], preferred_element_type=jnp.float32) + b1_ref[...]
    h1 = jnp.maximum(h1, 0.0)

    # fc2 + relu
    h2 = jnp.dot(h1, w2_ref[...], preferred_element_type=jnp.float32) + b2_ref[...]
    h2 = jnp.maximum(h2, 0.0)

    # fused heads: lanes [0, A) = policy logits, lane A = value, rest = padding
    heads = jnp.dot(h2, wh_ref[...], preferred_element_type=jnp.float32) + bh_ref[...]

    lane = lax.broadcasted_iota(jnp.int32, heads.shape, dimension=1)
    is_policy = lane < action_size
    is_value = lane == action_size

    # numerically-stable softmax over the policy lanes only (no infs anywhere)
    neg_big = jnp.float32(-1e30)
    logits = jnp.where(is_policy, heads, neg_big)
    m = jnp.max(logits, axis=-1, keepdims=True)
    e = jnp.where(is_policy, jnp.exp(heads - m), 0.0)
    probs = e / jnp.sum(e, axis=-1, keepdims=True)

    # lane-dense output slab: probs | value | zeros  (single unmasked wide store)
    out_ref[...] = jnp.where(
        is_policy, probs, jnp.where(is_value, heads, 0.0)
    ).astype(out_ref.dtype)


@functools.partial(jax.jit, static_argnames=("block_b",))
def pokernn_forward(x, params, block_b=512):
    """x: [B, state_size] float32. params: dict of weights/biases (see init_params).

    Returns (policy [B, action_size], value [B, 1]) matching the PyTorch module.
    """
    B, S = x.shape
    w1, b1 = params["w1"], params["b1"]          # [S, H], [1, H]
    w2, b2 = params["w2"], params["b2"]          # [H, H], [1, H]
    wp, bp = params["wp"], params["bp"]          # [H, A], [1, A]
    wv, bv = params["wv"], params["bv"]          # [H, 1], [1, 1]
    H = w1.shape[1]
    A = wp.shape[1]
    assert A + 1 <= _LANES, "action_size + 1 must fit in one 128-lane slab"

    # ---- one-time zero-padding of the feature dims to full lane width ----
    SP = _round_up(S, _LANES)                    # padded state_size
    HP = _round_up(H, _LANES)                    # padded hidden size
    f32 = jnp.float32

    w1p = jnp.zeros((SP, HP), f32).at[:S, :H].set(w1)
    b1p = jnp.zeros((1, HP), f32).at[:, :H].set(b1)
    w2p = jnp.zeros((HP, HP), f32).at[:H, :H].set(w2)
    b2p = jnp.zeros((1, HP), f32).at[:, :H].set(b2)
    # fused head weight: policy columns then value column, zero-padded to 128 lanes
    whp = (jnp.zeros((HP, _LANES), f32)
           .at[:H, :A].set(wp)
           .at[:H, A].set(wv[:, 0]))
    bhp = (jnp.zeros((1, _LANES), f32)
           .at[:, :A].set(bp)
           .at[:, A].set(bv[:, 0]))

    # ---- batch tiling: big tiles, padded ragged tail (no divisibility assert) ----
    bb = min(block_b, _round_up(B, 8))           # tile rows (multiple of 8 sublanes)
    bb = _round_up(bb, 8)
    Bp = _round_up(B, bb)                        # padded batch
    xp = jnp.zeros((Bp, SP), f32).at[:B, :S].set(x)

    grid = (Bp // bb,)

    def resident(shape):
        # constant block index -> fetched once, stays VMEM-resident across steps
        return pl.BlockSpec(shape, lambda i: (0, 0))

    cost = pl.CostEstimate(
        flops=2 * Bp * (SP * HP + HP * HP + HP * _LANES),
        transcendentals=Bp * _LANES,
        bytes_accessed=(xp.size + Bp * _LANES
                        + w1p.size + w2p.size + whp.size
                        + b1p.size + b2p.size + bhp.size) * 4,
    )

    out = pl.pallas_call(
        functools.partial(_pokernn_kernel, action_size=A),
        out_shape=jax.ShapeDtypeStruct((Bp, _LANES), f32),
        grid=grid,
        in_specs=[
            pl.BlockSpec((bb, SP), lambda i: (i, 0)),   # x tile
            resident(w1p.shape), resident(b1p.shape),
            resident(w2p.shape), resident(b2p.shape),
            resident(whp.shape), resident(bhp.shape),
        ],
        out_specs=pl.BlockSpec((bb, _LANES), lambda i: (i, 0)),
        compiler_params=pltpu.CompilerParams(
            dimension_semantics=("parallel",),
            vmem_limit_bytes=32 * 1024 * 1024,
        ),
        cost_estimate=cost,
    )(xp, w1p, b1p, w2p, b2p, whp, bhp)

    # free layout plumbing back to the PyTorch output shapes
    policy = out[:B, :A]
    value = out[:B, A:A + 1]
    return policy, value


def init_params(key, state_size, action_size, hidden=64):
    """Deterministic synthetic init (PyTorch-like uniform fan-in scaling)."""
    ks = jax.random.split(key, 8)

    def lin(kw, kb, fan_in, fan_out):
        bound = 1.0 / jnp.sqrt(fan_in)
        w = jax.random.uniform(kw, (fan_in, fan_out), jnp.float32, -bound, bound)
        b = jax.random.uniform(kb, (1, fan_out), jnp.float32, -bound, bound)
        return w, b

    w1, b1 = lin(ks[0], ks[1], state_size, hidden)
    w2, b2 = lin(ks[2], ks[3], hidden, hidden)
    wp, bp = lin(ks[4], ks[5], hidden, action_size)
    wv, bv = lin(ks[6], ks[7], hidden, 1)
    return dict(w1=w1, b1=b1, w2=w2, b2=b2, wp=wp, bp=bp, wv=wv, bv=bv)


def reference_forward(x, params):
    """Pure-JAX reference matching the PyTorch semantics."""
    h1 = jnp.maximum(x @ params["w1"] + params["b1"], 0.0)
    h2 = jnp.maximum(h1 @ params["w2"] + params["b2"], 0.0)
    policy = jax.nn.softmax(h2 @ params["wp"] + params["bp"], axis=-1)
    value = h2 @ params["wv"] + params["bv"]
    return policy, value


if __name__ == "__main__":
    key = jax.random.PRNGKey(0)
    k_param, k_x = jax.random.split(key)

    batch = 8
    state_size = 32
    action_size = 8

    params = init_params(k_param, state_size, action_size)
    x = jax.random.normal(k_x, (batch, state_size), jnp.float32)

    policy, value = pokernn_forward(x, params)
    policy, value = jax.block_until_ready((policy, value))

    # correctness check against pure-JAX reference
    ref_policy, ref_value = reference_forward(x, params)
    assert policy.shape == (batch, action_size)
    assert value.shape == (batch, 1)
    assert jnp.allclose(policy, ref_policy, atol=1e-5, rtol=1e-5)
    assert jnp.allclose(value, ref_value, atol=1e-5, rtol=1e-5)
    assert jnp.allclose(jnp.sum(policy, axis=-1), 1.0, atol=1e-5)

    # also exercise a ragged, multi-tile batch (padding path + >1 grid step)
    xb = jax.random.normal(k_x, (100, state_size), jnp.float32)
    pb, vb = jax.block_until_ready(pokernn_forward(xb, params, block_b=32))
    rpb, rvb = reference_forward(xb, params)
    assert pb.shape == (100, action_size) and vb.shape == (100, 1)
    assert jnp.allclose(pb, rpb, atol=1e-5, rtol=1e-5)
    assert jnp.allclose(vb, rvb, atol=1e-5, rtol=1e-5)

    print("KERNEL_OK")
</pallas_src>

<mosaic_0001>
module attributes {stable_mosaic.version = 11 : i64} {
  func.func @_pokernn_kernel(%arg0: i32, %arg1: memref<8x128xf32, #tpu.memory_space<vmem>>, %arg2: memref<128x128xf32, #tpu.memory_space<vmem>>, %arg3: memref<1x128xf32, #tpu.memory_space<vmem>>, %arg4: memref<128x128xf32, #tpu.memory_space<vmem>>, %arg5: memref<1x128xf32, #tpu.memory_space<vmem>>, %arg6: memref<128x128xf32, #tpu.memory_space<vmem>>, %arg7: memref<1x128xf32, #tpu.memory_space<vmem>>, %arg8: memref<8x128xf32, #tpu.memory_space<vmem>>) attributes {dimension_semantics = [#tpu.dimension_semantics<parallel>], iteration_bounds = array<i64: 1>, scalar_prefetch = 0 : i64, scratch_operands = 0 : i64, tpu.core_type = #tpu.core_type<tc>, window_params = [{transform_indices = @transform_0, window_bounds = array<i64: 8, 128>}, {pipeline_mode = #tpu.pipeline_mode<synchronous>, transform_indices = @transform_1, window_bounds = array<i64: 128, 128>}, {pipeline_mode = #tpu.pipeline_mode<synchronous>, transform_indices = @transform_2, window_bounds = array<i64: 1, 128>}, {pipeline_mode = #tpu.pipeline_mode<synchronous>, transform_indices = @transform_3, window_bounds = array<i64: 128, 128>}, {pipeline_mode = #tpu.pipeline_mode<synchronous>, transform_indices = @transform_4, window_bounds = array<i64: 1, 128>}, {pipeline_mode = #tpu.pipeline_mode<synchronous>, transform_indices = @transform_5, window_bounds = array<i64: 128, 128>}, {pipeline_mode = #tpu.pipeline_mode<synchronous>, transform_indices = @transform_6, window_bounds = array<i64: 1, 128>}, {transform_indices = @transform_7, window_bounds = array<i64: 8, 128>}]} {
    %c0 = arith.constant 0 : index
    %c0_0 = arith.constant 0 : index
    %0 = vector.load %arg1[%c0, %c0_0] : memref<8x128xf32, #tpu.memory_space<vmem>>, vector<8x128xf32>
    %c0_1 = arith.constant 0 : index
    %c0_2 = arith.constant 0 : index
    %1 = vector.load %arg2[%c0_1, %c0_2] : memref<128x128xf32, #tpu.memory_space<vmem>>, vector<128x128xf32>
    %cst = arith.constant dense<0.000000e+00> : vector<8x128xf32>
    %2 = tpu.matmul %0, %1, %cst {dimension_numbers = #tpu.dot_dimension_numbers<[1], [0], [0], [1], [0, 0, 1, 1], [], []>} : vector<8x128xf32>, vector<128x128xf32>, vector<8x128xf32> -> vector<8x128xf32>
    %c0_3 = arith.constant 0 : index
    %c0_4 = arith.constant 0 : index
    %3 = vector.load %arg3[%c0_3, %c0_4] : memref<1x128xf32, #tpu.memory_space<vmem>>, vector<1x128xf32>
    %4 = vector.broadcast %3 : vector<1x128xf32> to vector<8x128xf32>
    %5 = arith.addf %2, %4 : vector<8x128xf32>
    %cst_5 = arith.constant 0.000000e+00 : f32
    %6 = vector.broadcast %cst_5 : f32 to vector<8x128xf32>
    %7 = arith.maximumf %5, %6 : vector<8x128xf32>
    %c0_6 = arith.constant 0 : index
    %c0_7 = arith.constant 0 : index
    %8 = vector.load %arg4[%c0_6, %c0_7] : memref<128x128xf32, #tpu.memory_space<vmem>>, vector<128x128xf32>
    %cst_8 = arith.constant dense<0.000000e+00> : vector<8x128xf32>
    %9 = tpu.matmul %7, %8, %cst_8 {dimension_numbers = #tpu.dot_dimension_numbers<[1], [0], [0], [1], [0, 0, 1, 1], [], []>} : vector<8x128xf32>, vector<128x128xf32>, vector<8x128xf32> -> vector<8x128xf32>
    %c0_9 = arith.constant 0 : index
    %c0_10 = arith.constant 0 : index
    %10 = vector.load %arg5[%c0_9, %c0_10] : memref<1x128xf32, #tpu.memory_space<vmem>>, vector<1x128xf32>
    %11 = vector.broadcast %10 : vector<1x128xf32> to vector<8x128xf32>
    %12 = arith.addf %9, %11 : vector<8x128xf32>
    %cst_11 = arith.constant 0.000000e+00 : f32
    %13 = vector.broadcast %cst_11 : f32 to vector<8x128xf32>
    %14 = arith.maximumf %12, %13 : vector<8x128xf32>
    %c0_12 = arith.constant 0 : index
    %c0_13 = arith.constant 0 : index
    %15 = vector.load %arg6[%c0_12, %c0_13] : memref<128x128xf32, #tpu.memory_space<vmem>>, vector<128x128xf32>
    %cst_14 = arith.constant dense<0.000000e+00> : vector<8x128xf32>
    %16 = tpu.matmul %14, %15, %cst_14 {dimension_numbers = #tpu.dot_dimension_numbers<[1], [0], [0], [1], [0, 0, 1, 1], [], []>} : vector<8x128xf32>, vector<128x128xf32>, vector<8x128xf32> -> vector<8x128xf32>
    %c0_15 = arith.constant 0 : index
    %c0_16 = arith.constant 0 : index
    %17 = vector.load %arg7[%c0_15, %c0_16] : memref<1x128xf32, #tpu.memory_space<vmem>>, vector<1x128xf32>
    %18 = vector.broadcast %17 : vector<1x128xf32> to vector<8x128xf32>
    %19 = arith.addf %16, %18 : vector<8x128xf32>
    %20 = tpu.iota {dimensions = array<i32: 1>} : vector<8x128xi32>
    %c8_i32 = arith.constant 8 : i32
    %21 = vector.broadcast %c8_i32 : i32 to vector<8x128xi32>
    %22 = arith.cmpi slt, %20, %21 : vector<8x128xi32>
    %c8_i32_17 = arith.constant 8 : i32
    %23 = vector.broadcast %c8_i32_17 : i32 to vector<8x128xi32>
    %24 = arith.cmpi eq, %20, %23 : vector<8x128xi32>
    %cst_18 = arith.constant -1.000000e+30 : f32
    %25 = vector.broadcast %cst_18 : f32 to vector<8x128xf32>
    %26 = arith.select %22, %19, %25 : vector<8x128xi1>, vector<8x128xf32>
    %cst_19 = arith.constant dense<0xFF800000> : vector<8xf32>
    %27 = vector.multi_reduction <maximumf>, %26, %cst_19 [1] : vector<8x128xf32> to vector<8xf32>
    %28 = vector.shape_cast %27 : vector<8xf32> to vector<8x1xf32>
    %29 = vector.broadcast %28 : vector<8x1xf32> to vector<8x128xf32>
    %30 = arith.subf %19, %29 : vector<8x128xf32>
    %31 = math.exp %30 : vector<8x128xf32>
    %cst_20 = arith.constant 0.000000e+00 : f32
    %32 = vector.broadcast %cst_20 : f32 to vector<8x128xf32>
    %33 = arith.select %22, %31, %32 : vector<8x128xi1>, vector<8x128xf32>
    %cst_21 = arith.constant dense<0.000000e+00> : vector<8xf32>
    %34 = vector.multi_reduction <add>, %33, %cst_21 [1] : vector<8x128xf32> to vector<8xf32>
    %35 = vector.shape_cast %34 : vector<8xf32> to vector<8x1xf32>
    %36 = vector.broadcast %35 : vector<8x1xf32> to vector<8x128xf32>
    %37 = arith.divf %33, %36 : vector<8x128xf32>
    %cst_22 = arith.constant 0.000000e+00 : f32
    %38 = vector.broadcast %cst_22 : f32 to vector<8x128xf32>
    %39 = arith.select %24, %19, %38 : vector<8x128xi1>, vector<8x128xf32>
    %40 = arith.select %22, %37, %39 : vector<8x128xi1>, vector<8x128xf32>
    %c0_23 = arith.constant 0 : index
    %c0_24 = arith.constant 0 : index
    %41 = vector.load %arg8[%c0_23, %c0_24] : memref<8x128xf32, #tpu.memory_space<vmem>>, vector<8x128xf32>
    tpu.vector_store %arg8[%c0_23, %c0_24], %40 {strides = array<i32>} : memref<8x128xf32, #tpu.memory_space<vmem>>, vector<8x128xf32>,
    return
  }
  func.func @transform_0(%arg0: i32) -> (i32, i32) {
    %c0_i32 = arith.constant 0 : i32
    %c0_i32_0 = arith.constant 0 : i32
    return %arg0, %c0_i32 : i32, i32
  }
  func.func @transform_1(%arg0: i32) -> (i32, i32) {
    %c0_i32 = arith.constant 0 : i32
    %c0_i32_0 = arith.constant 0 : i32
    %c0_i32_1 = arith.constant 0 : i32
    return %c0_i32, %c0_i32_0 : i32, i32
  }
  func.func @transform_2(%arg0: i32) -> (i32, i32) {
    %c0_i32 = arith.constant 0 : i32
    %c0_i32_0 = arith.constant 0 : i32
    %c0_i32_1 = arith.constant 0 : i32
    return %c0_i32, %c0_i32_0 : i32, i32
  }
  func.func @transform_3(%arg0: i32) -> (i32, i32) {
    %c0_i32 = arith.constant 0 : i32
    %c0_i32_0 = arith.constant 0 : i32
    %c0_i32_1 = arith.constant 0 : i32
    return %c0_i32, %c0_i32_0 : i32, i32
  }
  func.func @transform_4(%arg0: i32) -> (i32, i32) {
    %c0_i32 = arith.constant 0 : i32
    %c0_i32_0 = arith.constant 0 : i32
    %c0_i32_1 = arith.constant 0 : i32
    return %c0_i32, %c0_i32_0 : i32, i32
  }
  func.func @transform_5(%arg0: i32) -> (i32, i32) {
    %c0_i32 = arith.constant 0 : i32
    %c0_i32_0 = arith.constant 0 : i32
    %c0_i32_1 = arith.constant 0 : i32
    return %c0_i32, %c0_i32_0 : i32, i32
  }
  func.func @transform_6(%arg0: i32) -> (i32, i32) {
    %c0_i32 = arith.constant 0 : i32
    %c0_i32_0 = arith.constant 0 : i32
    %c0_i32_1 = arith.constant 0 : i32
    return %c0_i32, %c0_i32_0 : i32, i32
  }
  func.func @transform_7(%arg0: i32) -> (i32, i32) {
    %c0_i32 = arith.constant 0 : i32
    %c0_i32_0 = arith.constant 0 : i32
    return %arg0, %c0_i32 : i32, i32
  }
}

</mosaic_0001>

<bundles_post_ra>
// kernel: pokernn_forward.1
= control target key start
LH: loop header
LB: loop body
LE: loop exit
PB: predicated region body
PF: predicated region fallthrough
CT: control target
= control target key end

     0   :  { %v495_v0 = vmov 0.0   ;;  %vm496_vm0 = vmmov 0   ;;  %v308_v60 = vlaneseq  ;;  %s753_s1 = inlined_call_operand.vmem [shape: f32[128,128], index: 1, kind: input, shape index: {}]   ;;  %s754_s3 = inlined_call_operand.vmem [shape: f32[128,128], index: 3, kind: input, shape index: {}]   ;;  %s755_s0 = inlined_call_operand.vmem [shape: f32[8,128], index: 0, kind: input, shape index: {}]   ;;  %s756_s5 = inlined_call_operand.vmem [shape: f32[128,128], index: 5, kind: input, shape index: {}]   ;;  %s757_s2 = inlined_call_operand.vmem [shape: f32[1,128], index: 2, kind: input, shape index: {}]   ;;  %s758_s4 = inlined_call_operand.vmem [shape: f32[1,128], index: 4, kind: input, shape index: {}]   ;;  %s759_s6 = inlined_call_operand.vmem [shape: f32[1,128], index: 6, kind: input, shape index: {}]   ;;  %s760_s7 = inlined_call_operand.vmem [shape: f32[8,128], index: 7, kind: output, shape index: {}]  }
   0x1   :  { %384 = vmatprep.subr.mxu0 %v495_v0  ;;  %v42_v1 = vld [vmem:[%s753_s1 + $0x78] sm:$0xff]  ;;  %v41_v2 = vld [vmem:[%s753_s1 + $0x70] sm:$0xff]  ;;  %416 = vmatprep.mubr.msk.f32.mxu0 %vm496_vm0, %v495_v0  ;;  %v40_v3 = vld [vmem:[%s753_s1 + $0x68] sm:$0xff] }
   0x2   :  { %385 = vmatpush3.msra.mxu0 %v42_v1  ;;  %419 = vmatprep.subr.mxu1 %v495_v0  ;;  %v39_v4 = vld [vmem:[%s753_s1 + $0x60] sm:$0xff]  ;;  %v136_v5 = vld [vmem:[%s754_s3 + $0x78] sm:$0xff]  ;;  %v135_v7 = vld [vmem:[%s754_s3 + $0x70] sm:$0xff]  ;;  %v309_v61 = vand.u32 127, %v308_v60 }
   0x3   :  { %386 = vmatprep.subr.mxu0 %v495_v0  ;;  %451 = vmatprep.mubr.msk.f32.mxu1 %vm496_vm0, %v495_v0  ;;  %v38_v6 = vld [vmem:[%s753_s1 + $0x58] sm:$0xff]  ;;  %v134_v8 = vld [vmem:[%s754_s3 + $0x68] sm:$0xff]  ;;  %v37_v9 = vld [vmem:[%s753_s1 + $0x50] sm:$0xff] }
   0x4   :  { %387 = vmatpush3.msra.mxu0 %v41_v2  ;;  %420 = vmatpush3.msra.mxu1 %v136_v5  ;;  %v133_v10 = vld [vmem:[%s754_s3 + $0x60] sm:$0xff]  ;;  %v36_v11 = vld [vmem:[%s753_s1 + $0x48] sm:$0xff]  ;;  %v132_v12 = vld [vmem:[%s754_s3 + $0x58] sm:$0xff]  ;;  %vm310_vm1 = vcmp.lt.s32.totalorder %v309_v61, 8  ;;  %vm311_vm2 = vcmp.eq.s32.totalorder %v309_v61, 8 }
   0x5   :  { %388 = vmatprep.subr.mxu0 %v495_v0  ;;  %421 = vmatprep.subr.mxu1 %v495_v0  ;;  %v35_v13 = vld [vmem:[%s753_s1 + $0x40] sm:$0xff]  ;;  %v131_v14 = vld [vmem:[%s754_s3 + $0x50] sm:$0xff]  ;;  %v34_v15 = vld [vmem:[%s753_s1 + $0x38] sm:$0xff] }
   0x6   :  { %389 = vmatpush3.msra.mxu0 %v40_v3  ;;  %422 = vmatpush3.msra.mxu1 %v135_v7  ;;  %v130_v16 = vld [vmem:[%s754_s3 + $0x48] sm:$0xff]  ;;  %v33_v17 = vld [vmem:[%s753_s1 + $0x30] sm:$0xff]  ;;  %v129_v18 = vld [vmem:[%s754_s3 + $0x40] sm:$0xff] }
   0x7   :  { %390 = vmatprep.subr.mxu0 %v495_v0  ;;  %423 = vmatprep.subr.mxu1 %v495_v0  ;;  %v32_v19 = vld [vmem:[%s753_s1 + $0x28] sm:$0xff]  ;;  %v128_v20 = vld [vmem:[%s754_s3 + $0x38] sm:$0xff]  ;;  %v31_v21 = vld [vmem:[%s753_s1 + $0x20] sm:$0xff] }
   0x8   :  { %391 = vmatpush3.msra.mxu0 %v39_v4  ;;  %424 = vmatpush3.msra.mxu1 %v134_v8  ;;  %v127_v22 = vld [vmem:[%s754_s3 + $0x30] sm:$0xff]  ;;  %v30_v23 = vld [vmem:[%s753_s1 + $0x18] sm:$0xff]  ;;  %v126_v24 = vld [vmem:[%s754_s3 + $0x28] sm:$0xff] }
   0x9   :  { %392 = vmatprep.subr.mxu0 %v495_v0  ;;  %425 = vmatprep.subr.mxu1 %v495_v0  ;;  %v29_v25 = vld [vmem:[%s753_s1 + $0x10] sm:$0xff]  ;;  %v125_v26 = vld [vmem:[%s754_s3 + $0x20] sm:$0xff]  ;;  %v28_v27 = vld [vmem:[%s753_s1 + $0x8] sm:$0xff] }
   0xa   :  { %393 = vmatpush3.msra.mxu0 %v38_v6  ;;  %426 = vmatpush3.msra.mxu1 %v133_v10  ;;  %v124_v28 = vld [vmem:[%s754_s3 + $0x18] sm:$0xff]  ;;  %v27_v29 = vld [vmem:[%s753_s1] sm:$0xff]  ;;  %v123_v31 = vld [vmem:[%s754_s3 + $0x10] sm:$0xff] }
   0xb   :  { %394 = vmatprep.subr.mxu0 %v495_v0  ;;  %427 = vmatprep.subr.mxu1 %v495_v0  ;;  %v26_v30 = vld [vmem:[%s755_s0] sm:$0xff]  ;;  %v122_v32 = vld [vmem:[%s754_s3 + $0x8] sm:$0xff]  ;;  %v230_v34 = vld [vmem:[%s756_s5 + $0x78] sm:$0xff] }
   0xc   :  { %395 = vmatpush3.msra.mxu0 %v37_v9  ;;  %428 = vmatpush3.msra.mxu1 %v132_v12  ;;  %v121_v33 = vld [vmem:[%s754_s3] sm:$0xff]  ;;  %v229_v35 = vld [vmem:[%s756_s5 + $0x70] sm:$0xff]  ;;  %v228_v36 = vld [vmem:[%s756_s5 + $0x68] sm:$0xff] }
   0xd   :  { %396 = vmatprep.subr.mxu0 %v495_v0  ;;  %429 = vmatprep.subr.mxu1 %v495_v0  ;;  %v227_v37 = vld [vmem:[%s756_s5 + $0x60] sm:$0xff]  ;;  %v226_v38 = vld [vmem:[%s756_s5 + $0x58] sm:$0xff]  ;;  %v225_v39 = vld [vmem:[%s756_s5 + $0x50] sm:$0xff] }
   0xe   :  { %397 = vmatpush3.msra.mxu0 %v36_v11  ;;  %430 = vmatpush3.msra.mxu1 %v131_v14  ;;  %v224_v40 = vld [vmem:[%s756_s5 + $0x48] sm:$0xff]  ;;  %v223_v41 = vld [vmem:[%s756_s5 + $0x40] sm:$0xff]  ;;  %v222_v42 = vld [vmem:[%s756_s5 + $0x38] sm:$0xff] }
   0xf   :  { %398 = vmatprep.subr.mxu0 %v495_v0  ;;  %431 = vmatprep.subr.mxu1 %v495_v0  ;;  %v221_v43 = vld [vmem:[%s756_s5 + $0x30] sm:$0xff]  ;;  %v220_v44 = vld [vmem:[%s756_s5 + $0x28] sm:$0xff]  ;;  %v219_v45 = vld [vmem:[%s756_s5 + $0x20] sm:$0xff] }
  0x10   :  { %399 = vmatpush3.msra.mxu0 %v35_v13  ;;  %432 = vmatpush3.msra.mxu1 %v130_v16  ;;  %v218_v46 = vld [vmem:[%s756_s5 + $0x18] sm:$0xff]  ;;  %v330_v47 = vld [vmem:[%s757_s2] ss:$0 sm:$0xff]  ;;  %v217_v52 = vld [vmem:[%s756_s5 + $0x10] sm:$0xff] }
  0x11   :  { %400 = vmatprep.subr.mxu0 %v495_v0  ;;  %433 = vmatprep.subr.mxu1 %v495_v0  ;;  %v216_v53 = vld [vmem:[%s756_s5 + $0x8] sm:$0xff]  ;;  %v215_v54 = vld [vmem:[%s756_s5] sm:$0xff] }
  0x12   :  { %401 = vmatpush3.msra.mxu0 %v34_v15  ;;  %434 = vmatpush3.msra.mxu1 %v129_v18  ;;  %v331_v55 = vld [vmem:[%s758_s4] ss:$0 sm:$0xff] }
  0x13   :  { %402 = vmatprep.subr.mxu0 %v495_v0  ;;  %435 = vmatprep.subr.mxu1 %v495_v0  ;;  %v332_v62 = vld [vmem:[%s759_s6] ss:$0 sm:$0xff] }
  0x14   :  { %403 = vmatpush3.msra.mxu0 %v33_v17  ;;  %436 = vmatpush3.msra.mxu1 %v128_v20 }
  0x15   :  { %404 = vmatprep.subr.mxu0 %v495_v0  ;;  %437 = vmatprep.subr.mxu1 %v495_v0 }
  0x16   :  { %405 = vmatpush3.msra.mxu0 %v32_v19  ;;  %438 = vmatpush3.msra.mxu1 %v127_v22 }
  0x17   :  { %406 = vmatprep.subr.mxu0 %v495_v0  ;;  %439 = vmatprep.subr.mxu1 %v495_v0 }
  0x18   :  { %407 = vmatpush3.msra.mxu0 %v31_v21  ;;  %440 = vmatpush3.msra.mxu1 %v126_v24 }
  0x19   :  { %408 = vmatprep.subr.mxu0 %v495_v0  ;;  %441 = vmatprep.subr.mxu1 %v495_v0 }
  0x1a   :  { %409 = vmatpush3.msra.mxu0 %v30_v23  ;;  %442 = vmatpush3.msra.mxu1 %v125_v26 }
  0x1b   :  { %410 = vmatprep.subr.mxu0 %v495_v0  ;;  %443 = vmatprep.subr.mxu1 %v495_v0 }
  0x1c   :  { %411 = vmatpush3.msra.mxu0 %v29_v25  ;;  %444 = vmatpush3.msra.mxu1 %v124_v28 }
  0x1d   :  { %412 = vmatprep.subr.mxu0 %v495_v0  ;;  %445 = vmatprep.subr.mxu1 %v495_v0 }
  0x1e   :  { %413 = vmatpush3.msra.mxu0 %v28_v27  ;;  %446 = vmatpush3.msra.mxu1 %v123_v31 }
  0x1f   :  { %414 = vmatprep.subr.mxu0 %v495_v0  ;;  %447 = vmatprep.subr.mxu1 %v495_v0 }
  0x20   :  { %415 = vmatpush3.msra.mxu0 %v27_v29  ;;  %448 = vmatpush3.msra.mxu1 %v122_v32 }
  0x21   :  { %417 = vmatmul.mubr.f32.vlgmr.msra.gmra.mxu0 %v26_v30  ;;  %454 = vmatprep.subr.mxu0 %v495_v0 }
  0x22   :  { %486 = vmatprep.mubr.msk.f32.mxu0 %vm496_vm0, %v495_v0  ;;  %449 = vmatprep.subr.mxu1 %v495_v0 }
  0x23   :  { %450 = vmatpush3.msra.mxu1 %v121_v33  ;;  %455 = vmatpush3.msra.mxu0 %v230_v34 }
  0x24   :  { %456 = vmatprep.subr.mxu0 %v495_v0 }
  0x25   :  { %457 = vmatpush3.msra.mxu0 %v229_v35 }
  0x26   :  { %458 = vmatprep.subr.mxu0 %v495_v0 }
  0x27   :  { %459 = vmatpush3.msra.mxu0 %v228_v36 }
  0x28   :  { %460 = vmatprep.subr.mxu0 %v495_v0 }
  0x29   :  { %461 = vmatpush3.msra.mxu0 %v227_v37 }
  0x2a   :  { %462 = vmatprep.subr.mxu0 %v495_v0 }
  0x2b   :  { %463 = vmatpush3.msra.mxu0 %v226_v38 }
  0x2c   :  { %464 = vmatprep.subr.mxu0 %v495_v0 }
  0x2d   :  { %465 = vmatpush3.msra.mxu0 %v225_v39 }
  0x2e   :  { %466 = vmatprep.subr.mxu0 %v495_v0 }
  0x2f   :  { %467 = vmatpush3.msra.mxu0 %v224_v40 }
  0x30   :  { %468 = vmatprep.subr.mxu0 %v495_v0 }
  0x31   :  { %469 = vmatpush3.msra.mxu0 %v223_v41 }
  0x32   :  { %470 = vmatprep.subr.mxu0 %v495_v0 }
  0x33   :  { %471 = vmatpush3.msra.mxu0 %v222_v42 }
  0x34   :  { %472 = vmatprep.subr.mxu0 %v495_v0 }
  0x35   :  { %473 = vmatpush3.msra.mxu0 %v221_v43 }
  0x36   :  { %474 = vmatprep.subr.mxu0 %v495_v0 }
  0x37   :  { %475 = vmatpush3.msra.mxu0 %v220_v44 }
  0x38   :  { %476 = vmatprep.subr.mxu0 %v495_v0 }
  0x39   :  { %477 = vmatpush3.msra.mxu0 %v219_v45 }
  0x3a   :  { %478 = vmatprep.subr.mxu0 %v495_v0 }
  0x3b   :  { %479 = vmatpush3.msra.mxu0 %v218_v46 }
  0x3c   :  { %480 = vmatprep.subr.mxu0 %v495_v0 }
  0x3d   :  { %481 = vmatpush3.msra.mxu0 %v217_v52 }
  0x3e   :  { %482 = vmatprep.subr.mxu0 %v495_v0 }
  0x3f   :  { %483 = vmatpush3.msra.mxu0 %v216_v53 }
  0x40   :  { %484 = vmatprep.subr.mxu0 %v495_v0 }
  0x41   :  { %485 = vmatpush3.msra.mxu0 %v215_v54 }
  0xe1   :  { %v116_v48 = vpop.f32.mrf.mxu0 }
  0xe2   :  { %v117_v49 = vadd.f32 %v330_v47, %v116_v48 }
  0xe3   :  { %v418_v50 = vpop.f32.mrf.mxu0 }
  0xe4   :  { %v120_v51 = vmax.f32 %v117_v49, 0.0 }
  0xe6   :  { %452 = vmatmul.mubr.f32.vlgmr.msra.gmra.mxu1 %v120_v51 }
 0x1a6   :  { %v210_v56 = vpop.f32.mrf.mxu1 }
 0x1a7   :  { %v211_v57 = vadd.f32 %v331_v55, %v210_v56 }
 0x1a8   :  { %v453_v58 = vpop.f32.mrf.mxu1 }
 0x1a9   :  { %v214_v59 = vmax.f32 %v211_v57, 0.0 }
 0x1ab   :  { %487 = vmatmul.mubr.f32.vlgmr.msra.gmra.mxu0 %v214_v59 }
 0x26b   :  { %v304_v63 = vpop.f32.mrf.mxu0 }
 0x26c   :  { %v305_v0 = vadd.f32 %v332_v62, %v304_v63 }
 0x26d   :  { %v488_v1 = vpop.f32.mrf.mxu0 }
 0x26e   :  { %v312_v2 = vsel %vm310_vm1, %v305_v0, -1e+30  ;;  %v323_v11 = vsel %vm311_vm2, %v305_v0, 0.0 }
 0x26f   :  { %313 = vmax.xlane.f32.xlu0 %v312_v2 }
 0x2f8   :  { %v314_v3 = vpop.xlane.xlu0 %313 }
 0x2f9   :  { %v315_v4 = vsub.f32 %v305_v0, %v314_v3 }
 0x2fb   :  { %v316_v5 = vmul.f32 1.442695, %v315_v4 }
 0x2fd   :  { %491 = vpow2.f32 %v316_v5 }
 0x30a   :  { %v492_v6 = vpop.eup %491 }
 0x30b   :  { %v318_v7 = vsel %vm310_vm1, %v492_v6, 0.0 }
 0x30c   :  { %319 = vadd.xlane.f32.xlu0 %v318_v7 }
 0x395   :  { %v320_v8 = vpop.xlane.xlu0 %319 }
 0x396   :  { %493 = vrcp.f32 %v320_v8 }
 0x3a3   :  { %v494_v9 = vpop.eup %493 }
 0x3a4   :  { %v322_v10 = vmul.f32 %v494_v9, %v318_v7 }
 0x3a6   :  { %v324_v12 = vsel %vm310_vm1, %v322_v10, %v323_v11 }
 0x3a7   :  { %325 = vst [vmem:[%s760_s7] sm:$0xff] %v324_v12 }

</bundles_post_ra>
